<compile_context>
chip_gen: v5e
topology: v5e:2x2
jax: 0.10.0
libtpu: 0.0.40
codegen_flags: <defaults>
</compile_context>

<pallas_src>
from functools import partial

import jax
import jax.numpy as jnp
from jax import lax
from jax.experimental import pallas as pl
from jax.experimental.pallas import tpu as pltpu

_LANE = 128  # width of the resident params slab / MLP activations / output


def _round_up(n, m):
    return ((n + m - 1) // m) * m


# --------------------------------------------------------------------------
# Kernel 1: global_mean_pool + MLP router
# --------------------------------------------------------------------------
def _router_kernel(n_linear, in_dim, b_pad, rem, has_tail,
                   batch_ref, x_ref, w_ref, out_ref, acc_ref, cnt_ref):
    """Segment-sum pooling accumulated over node chunks + fused MLP finalize."""
    step = pl.program_id(0)
    last = pl.num_programs(0) - 1

    @pl.when(step == 0)
    def _init():
        acc_ref[...] = jnp.zeros_like(acc_ref)
        cnt_ref[...] = jnp.zeros_like(cnt_ref)

    batch_blk = batch_ref[...]                           # [1, tile_n] int32
    x_blk = x_ref[...]                                   # [tile_n, in_dim]
    tile_n = batch_blk.shape[1]
    gid = lax.broadcasted_iota(jnp.int32, (b_pad, tile_n), 0)
    sel = gid == batch_blk                               # [b_pad, tile_n] one-hot

    def _accum(sel_m, xb):
        m = sel_m.astype(xb.dtype)
        acc_ref[...] += jnp.dot(m, xb, preferred_element_type=jnp.float32)
        cnt_ref[...] += jnp.sum(sel_m.astype(jnp.float32), axis=1,
                                keepdims=True)

    if has_tail:
        # Only the final (partial) chunk pays for the tail masking.
        @pl.when(step < last)
        def _full_chunk():
            _accum(sel, x_blk)

        @pl.when(step == last)
        def _tail_chunk():
            lane = lax.broadcasted_iota(jnp.int32, (1, tile_n), 1)
            row = lax.broadcasted_iota(jnp.int32, (tile_n, 1), 0)
            # Rows past `rem` are out-of-bounds reads (unspecified contents):
            # drop them from the one-hot mask and zero them in x so no
            # garbage (possibly non-finite) value reaches the accumulator.
            _accum(sel & (lane < rem), jnp.where(row < rem, x_blk, 0))
    else:
        _accum(sel, x_blk)

    @pl.when(step == last)
    def _finalize():
        cnt = cnt_ref[...]                               # [b_pad, 1]
        z = acc_ref[...] / jnp.maximum(cnt, 1.0)         # mean; empty graph -> 0
        # First layer uses the narrow top-left block of the params slab;
        # adding the bias row (row 127) also plants the carry 1 in column 127
        # that propagates the biases through every later layer.
        w0 = w_ref[0]                                    # [128, 128] f32
        h = jnp.dot(z, w0[:in_dim, :], preferred_element_type=jnp.float32)
        h = h + w0[_LANE - 1:_LANE, :]
        for i in range(1, n_linear):
            h = jnp.maximum(h, 0.0)                      # ReLU between layers
            h = jnp.dot(h, w_ref[i], preferred_element_type=jnp.float32)
        out_ref[...] = h.astype(out_ref.dtype)           # lane-dense [b_pad,128]


def mlp_router_forward(x, batch, weights, biases, num_graphs, *, tile_n=None):
    """global_mean_pool(x, batch) followed by the router MLP, one pallas_call.

    x: [N, D] float (f32 or bf16; bf16 halves DMA, accumulation stays f32).
    batch: [N] int graph ids in [0, num_graphs).
    weights[i]: [in_i, out_i] (transpose of torch Linear weight); biases[i]: [out_i].
    Returns logits [num_graphs, num_experts] in float32.
    """
    n_nodes, in_dim = x.shape
    n_linear = len(weights)
    num_experts = weights[-1].shape[1]
    dims = [in_dim] + [w.shape[1] for w in weights]
    assert n_linear >= 1 and num_graphs >= 1
    assert max(dims) <= _LANE - 1, "feature dims must fit below the carry column"

    if n_nodes == 0:
        # Degenerate batch: synthesize one node that matches no graph so the
        # kernel still returns MLP(0) (= bias-only) logits for every graph.
        x = jnp.zeros((1, in_dim), x.dtype)
        batch = jnp.full((1,), -1, jnp.int32)
        n_nodes = 1

    b_pad = _round_up(max(num_graphs, 1), 8)             # 8-sublane graph axis

    if tile_n is None:
        # Target ~512 KB per x DMA (mem-bound roofline), keep lane-aligned.
        row_bytes = in_dim * x.dtype.itemsize
        tile_n = (512 * 1024) // max(row_bytes, 1)
        tile_n = max(512, min(32768, tile_n))
    tile_n = max(128, (tile_n // 128) * 128)
    tile_n = min(tile_n, _round_up(n_nodes, 128))

    num_chunks = max(1, pl.cdiv(n_nodes, tile_n))
    rem = n_nodes - (num_chunks - 1) * tile_n            # valid nodes, last chunk
    has_tail = rem < tile_n

    # Graph ids as a [1, N] row (metadata reshape, no feature copy).
    batch2d = batch.astype(jnp.int32).reshape(1, n_nodes)

    # Resident parameter slab [L, 128, 128] f32: weight in the top-left block,
    # bias folded into row 127, unit "carry" entry at (127, 127).
    params = jnp.zeros((n_linear, _LANE, _LANE), jnp.float32)
    for i, (w, b) in enumerate(zip(weights, biases)):
        di, do = w.shape
        params = params.at[i, :di, :do].set(w.astype(jnp.float32))
        params = params.at[i, _LANE - 1, :do].set(b.astype(jnp.float32))
        params = params.at[i, _LANE - 1, _LANE - 1].set(1.0)

    kernel = partial(_router_kernel, n_linear, in_dim, b_pad, rem, has_tail)
    out = pl.pallas_call(
        kernel,
        out_shape=jax.ShapeDtypeStruct((b_pad, _LANE), jnp.float32),
        grid=(num_chunks,),
        in_specs=[
            pl.BlockSpec((1, tile_n), lambda c: (0, c)),
            pl.BlockSpec((tile_n, in_dim), lambda c: (c, 0)),   # raw narrow x
            pl.BlockSpec((n_linear, _LANE, _LANE), lambda c: (0, 0, 0)),
        ],
        out_specs=pl.BlockSpec((b_pad, _LANE), lambda c: (0, 0)),
        scratch_shapes=[
            pltpu.VMEM((b_pad, in_dim), jnp.float32),    # pooled segment-sum
            pltpu.VMEM((b_pad, 1), jnp.float32),         # per-graph node count
        ],
        compiler_params=pltpu.CompilerParams(
            dimension_semantics=("arbitrary",)),         # node axis = reduction
    )(batch2d, x, params)
    return out[:num_graphs, :num_experts]


# --------------------------------------------------------------------------
# Kernel 2: MoE_E mixing -- softmax(logits) weighted sum of expert outputs
# --------------------------------------------------------------------------
def _combine_kernel(num_experts, logits_ref, outs_ref, y_ref):
    logits = logits_ref[...].astype(jnp.float32)         # [tile_b, E]
    m = jnp.max(logits, axis=-1, keepdims=True)
    e = jnp.exp(logits - m)
    w = e / jnp.sum(e, axis=-1, keepdims=True)           # softmax weights
    # E == 2 for MoE_E; an unrolled VPU loop beats a K=2 MXU contraction.
    y = w[:, 0:1] * outs_ref[0].astype(jnp.float32)
    for i in range(1, num_experts):
        y = y + w[:, i:i + 1] * outs_ref[i].astype(jnp.float32)
    y_ref[...] = y.astype(y_ref.dtype)


def moe_combine(logits, expert_outs, *, tile_b=None, tile_f=512):
    """y = sum_i softmax(logits)[:, i, None] * expert_outs[i].

    logits: [B, E]; expert_outs: [E, B, F] -> y: [B, F]. Tiled over (B, F)."""
    num_exp, b, f = expert_outs.shape
    assert logits.shape == (b, num_exp)

    f_pad = _round_up(f, 128)
    if f_pad != f:
        # TODO(synk): keep expert output widths a multiple of 128 upstream to
        # avoid this padding copy (lane-dense stores without it).
        expert_outs = jnp.pad(expert_outs, ((0, 0), (0, 0), (0, f_pad - f)))

    if tile_b is None:
        tile_b = b if b <= 1024 else 512
    tile_b = min(tile_b, b)
    if tile_b != b:
        tile_b = max(8, (tile_b // 8) * 8)
    tile_f = min(_round_up(max(tile_f, 128), 128), f_pad)

    grid = (pl.cdiv(b, tile_b), pl.cdiv(f_pad, tile_f))
    kernel = partial(_combine_kernel, num_exp)
    out = pl.pallas_call(
        kernel,
        out_shape=jax.ShapeDtypeStruct((b, f_pad), expert_outs.dtype),
        grid=grid,
        in_specs=[
            pl.BlockSpec((tile_b, num_exp), lambda i, j: (i, 0)),
            pl.BlockSpec((num_exp, tile_b, tile_f), lambda i, j: (0, i, j)),
        ],
        out_specs=pl.BlockSpec((tile_b, tile_f), lambda i, j: (i, j)),
        compiler_params=pltpu.CompilerParams(
            dimension_semantics=("parallel", "parallel")),
    )(logits, expert_outs)
    return out[:, :f] if f_pad != f else out


# --------------------------------------------------------------------------
# Pure-JAX references
# --------------------------------------------------------------------------
def _reference_router(x, batch, weights, biases, num_graphs):
    one_hot = (jnp.arange(num_graphs)[:, None] == batch[None, :]).astype(jnp.float32)
    counts = one_hot.sum(axis=1, keepdims=True)
    z = (one_hot @ x.astype(jnp.float32)) / jnp.maximum(counts, 1.0)
    h = z
    for i, (w, b) in enumerate(zip(weights, biases)):
        h = h @ w + b[None, :]
        if i < len(weights) - 1:
            h = jnp.maximum(h, 0.0)
    return h


def _reference_combine(logits, expert_outs):
    w = jax.nn.softmax(logits.astype(jnp.float32), axis=-1)
    return sum(w[:, i:i + 1] * expert_outs[i].astype(jnp.float32)
               for i in range(expert_outs.shape[0]))


if __name__ == "__main__":
    key = jax.random.PRNGKey(0)

    # MoE_E config: MLP router, num_experts = len(args.layer_types) = 2.
    input_dim = 8
    router_hidden_layers = [32, 16]
    num_experts = 2
    num_graphs = 3
    nodes_per_graph = (400, 350, 250)          # 1000 nodes total
    expert_out_dim = 256                       # per-graph expert output width

    n_nodes = sum(nodes_per_graph)
    k_x, k_p, k_e = jax.random.split(key, 3)
    x = jax.random.normal(k_x, (n_nodes, input_dim), dtype=jnp.float32)
    batch = jnp.concatenate([jnp.full((n,), g, jnp.int32)
                             for g, n in enumerate(nodes_per_graph)])

    dims = [input_dim] + router_hidden_layers + [num_experts]
    weights, biases = [], []
    for i in range(len(dims) - 1):
        k_p, kw_i, kb_i = jax.random.split(k_p, 3)
        bound = 1.0 / float(dims[i]) ** 0.5
        weights.append(jax.random.uniform(kw_i, (dims[i], dims[i + 1]),
                                          minval=-bound, maxval=bound,
                                          dtype=jnp.float32))
        biases.append(jax.random.uniform(kb_i, (dims[i + 1],),
                                         minval=-bound, maxval=bound,
                                         dtype=jnp.float32))

    # Placeholder per-graph expert outputs (the expert GNNs are not part of
    # the translated spec -- see TODO at the top of the file).
    expert_outs = jax.random.normal(
        k_e, (num_experts, num_graphs, expert_out_dim), dtype=jnp.float32)

    ref_logits = _reference_router(x, batch, weights, biases, num_graphs)

    # ---- router, default tiling (single chunk with a masked tail) ---------
    logits = mlp_router_forward(x, batch, weights, biases, num_graphs)
    logits = jax.block_until_ready(logits)
    assert logits.shape == (num_graphs, num_experts)
    assert jnp.allclose(logits, ref_logits, atol=1e-4, rtol=1e-4), (
        float(jnp.max(jnp.abs(logits - ref_logits))))

    # ---- router, multi-chunk pipelined path (tile_n=256 -> 4 node chunks) -
    logits_mc = mlp_router_forward(x, batch, weights, biases, num_graphs,
                                   tile_n=256)
    logits_mc = jax.block_until_ready(logits_mc)
    assert jnp.allclose(logits_mc, ref_logits, atol=1e-4, rtol=1e-4), (
        float(jnp.max(jnp.abs(logits_mc - ref_logits))))

    # ---- router, bf16 x stream (half the DMA bytes; f32 accumulation) -----
    logits_bf16 = mlp_router_forward(x.astype(jnp.bfloat16), batch,
                                     weights, biases, num_graphs)
    logits_bf16 = jax.block_until_ready(logits_bf16)
    assert jnp.allclose(logits_bf16, ref_logits, atol=5e-2, rtol=5e-2), (
        float(jnp.max(jnp.abs(logits_bf16 - ref_logits))))

    # ---- MoE mixing: softmax(logits) weighted sum of expert outputs -------
    y = moe_combine(logits, expert_outs, tile_f=128)
    y = jax.block_until_ready(y)
    ref_y = _reference_combine(logits, expert_outs)
    assert y.shape == (num_graphs, expert_out_dim)
    assert jnp.allclose(y, ref_y, atol=1e-5, rtol=1e-5), (
        float(jnp.max(jnp.abs(y - ref_y))))

    print("KERNEL_OK")
</pallas_src>

<mosaic_0001>
module attributes {stable_mosaic.version = 11 : i64} {
  func.func @_router_kernel(%arg0: i32, %arg1: memref<1x1024xi32, #tpu.memory_space<vmem>>, %arg2: memref<1024x8xf32, #tpu.memory_space<vmem>>, %arg3: memref<3x128x128xf32, #tpu.memory_space<vmem>>, %arg4: memref<8x128xf32, #tpu.memory_space<vmem>>, %arg5: memref<8x8xf32, #tpu.memory_space<vmem>>, %arg6: memref<8x1xf32, #tpu.memory_space<vmem>>) attributes {dimension_semantics = [#tpu.dimension_semantics<arbitrary>], iteration_bounds = array<i64: 1>, scalar_prefetch = 0 : i64, scratch_operands = 2 : i64, tpu.core_type = #tpu.core_type<tc>, window_params = [{transform_indices = @transform_0, window_bounds = array<i64: 1, 1024>}, {transform_indices = @transform_1, window_bounds = array<i64: 1024, 8>}, {pipeline_mode = #tpu.pipeline_mode<synchronous>, transform_indices = @transform_2, window_bounds = array<i64: 3, 128, 128>}, {pipeline_mode = #tpu.pipeline_mode<synchronous>, transform_indices = @transform_3, window_bounds = array<i64: 8, 128>}]} {
    %c0_i32 = arith.constant 0 : i32
    %0 = arith.cmpi eq, %arg0, %c0_i32 : i32
    %1 = arith.extui %0 : i1 to i32
    %c0_i32_0 = arith.constant 0 : i32
    %2 = arith.cmpi ne, %1, %c0_i32_0 : i32
    scf.if %2 {
      %cst = arith.constant 0.000000e+00 : f32
      %17 = vector.broadcast %cst : f32 to vector<8x8xf32>
      %c0_10 = arith.constant 0 : index
      %c0_11 = arith.constant 0 : index
      %18 = vector.load %arg5[%c0_10, %c0_11] : memref<8x8xf32, #tpu.memory_space<vmem>>, vector<8x8xf32>
      tpu.vector_store %arg5[%c0_10, %c0_11], %17 {strides = array<i32>} : memref<8x8xf32, #tpu.memory_space<vmem>>, vector<8x8xf32>,
      %cst_12 = arith.constant 0.000000e+00 : f32
      %19 = vector.broadcast %cst_12 : f32 to vector<8x1xf32>
      %c0_13 = arith.constant 0 : index
      %c0_14 = arith.constant 0 : index
      %20 = vector.load %arg6[%c0_13, %c0_14] : memref<8x1xf32, #tpu.memory_space<vmem>>, vector<8x1xf32>
      tpu.vector_store %arg6[%c0_13, %c0_14], %19 {strides = array<i32>} : memref<8x1xf32, #tpu.memory_space<vmem>>, vector<8x1xf32>,
    } else {
    }
    %c0 = arith.constant 0 : index
    %c0_1 = arith.constant 0 : index
    %3 = vector.load %arg1[%c0, %c0_1] : memref<1x1024xi32, #tpu.memory_space<vmem>>, vector<1x1024xi32>
    %c0_2 = arith.constant 0 : index
    %c0_3 = arith.constant 0 : index
    %4 = vector.load %arg2[%c0_2, %c0_3] : memref<1024x8xf32, #tpu.memory_space<vmem>>, vector<1024x8xf32>
    %5 = tpu.iota {dimensions = array<i32: 0>} : vector<8x1024xi32>
    %6 = vector.broadcast %3 : vector<1x1024xi32> to vector<8x1024xi32>
    %7 = arith.cmpi eq, %5, %6 : vector<8x1024xi32>
    %c0_i32_4 = arith.constant 0 : i32
    %8 = arith.cmpi slt, %arg0, %c0_i32_4 : i32
    %9 = arith.extui %8 : i1 to i32
    %c0_i32_5 = arith.constant 0 : i32
    %10 = arith.cmpi ne, %9, %c0_i32_5 : i32
    scf.if %10 {
      %17 = arith.extui %7 : vector<8x1024xi1> to vector<8x1024xi32>
      %18 = arith.sitofp %17 : vector<8x1024xi32> to vector<8x1024xf32>
      %c0_10 = arith.constant 0 : index
      %c0_11 = arith.constant 0 : index
      %19 = vector.load %arg5[%c0_10, %c0_11] : memref<8x8xf32, #tpu.memory_space<vmem>>, vector<8x8xf32>
      %cst = arith.constant dense<0.000000e+00> : vector<8x8xf32>
      %20 = tpu.matmul %18, %4, %cst {dimension_numbers = #tpu.dot_dimension_numbers<[1], [0], [0], [1], [0, 0, 1, 1], [], []>} : vector<8x1024xf32>, vector<1024x8xf32>, vector<8x8xf32> -> vector<8x8xf32>
      %21 = arith.addf %19, %20 : vector<8x8xf32>
      %c0_12 = arith.constant 0 : index
      %c0_13 = arith.constant 0 : index
      %22 = vector.load %arg5[%c0_12, %c0_13] : memref<8x8xf32, #tpu.memory_space<vmem>>, vector<8x8xf32>
      tpu.vector_store %arg5[%c0_12, %c0_13], %21 {strides = array<i32>} : memref<8x8xf32, #tpu.memory_space<vmem>>, vector<8x8xf32>,
      %c0_14 = arith.constant 0 : index
      %c0_15 = arith.constant 0 : index
      %23 = vector.load %arg6[%c0_14, %c0_15] : memref<8x1xf32, #tpu.memory_space<vmem>>, vector<8x1xf32>
      %24 = arith.extui %7 : vector<8x1024xi1> to vector<8x1024xi32>
      %25 = arith.sitofp %24 : vector<8x1024xi32> to vector<8x1024xf32>
      %cst_16 = arith.constant dense<0.000000e+00> : vector<8xf32>
      %26 = vector.multi_reduction <add>, %25, %cst_16 [1] : vector<8x1024xf32> to vector<8xf32>
      %27 = vector.shape_cast %26 : vector<8xf32> to vector<8x1xf32>
      %28 = arith.addf %23, %27 : vector<8x1xf32>
      %c0_17 = arith.constant 0 : index
      %c0_18 = arith.constant 0 : index
      %29 = vector.load %arg6[%c0_17, %c0_18] : memref<8x1xf32, #tpu.memory_space<vmem>>, vector<8x1xf32>
      tpu.vector_store %arg6[%c0_17, %c0_18], %28 {strides = array<i32>} : memref<8x1xf32, #tpu.memory_space<vmem>>, vector<8x1xf32>,
    } else {
    }
    %c0_i32_6 = arith.constant 0 : i32
    %11 = arith.cmpi eq, %arg0, %c0_i32_6 : i32
    %12 = arith.extui %11 : i1 to i32
    %c0_i32_7 = arith.constant 0 : i32
    %13 = arith.cmpi ne, %12, %c0_i32_7 : i32
    scf.if %13 {
      %17 = tpu.iota {dimensions = array<i32: 1>} : vector<1x1024xi32>
      %18 = tpu.iota {dimensions = array<i32: 0>} : vector<1024x1xi32>
      %c1000_i32 = arith.constant 1000 : i32
      %19 = vector.broadcast %c1000_i32 : i32 to vector<1x1024xi32>
      %20 = arith.cmpi slt, %17, %19 : vector<1x1024xi32>
      %21 = vector.broadcast %20 : vector<1x1024xi1> to vector<8x1024xi1>
      %22 = arith.andi %7, %21 : vector<8x1024xi1>
      %c1000_i32_10 = arith.constant 1000 : i32
      %23 = vector.broadcast %c1000_i32_10 : i32 to vector<1024x1xi32>
      %24 = arith.cmpi slt, %18, %23 : vector<1024x1xi32>
      %c0_i32_11 = arith.constant 0 : i32
      %25 = arith.sitofp %c0_i32_11 : i32 to f32
      %26 = vector.shape_cast %24 : vector<1024x1xi1> to vector<1024x1xi1>
      %27 = vector.broadcast %26 : vector<1024x1xi1> to vector<1024x8xi1>
      %28 = vector.broadcast %25 : f32 to vector<1024x8xf32>
      %29 = arith.select %27, %4, %28 : vector<1024x8xi1>, vector<1024x8xf32>
      %30 = arith.extui %22 : vector<8x1024xi1> to vector<8x1024xi32>
      %31 = arith.sitofp %30 : vector<8x1024xi32> to vector<8x1024xf32>
      %c0_12 = arith.constant 0 : index
      %c0_13 = arith.constant 0 : index
      %32 = vector.load %arg5[%c0_12, %c0_13] : memref<8x8xf32, #tpu.memory_space<vmem>>, vector<8x8xf32>
      %cst = arith.constant dense<0.000000e+00> : vector<8x8xf32>
      %33 = tpu.matmul %31, %29, %cst {dimension_numbers = #tpu.dot_dimension_numbers<[1], [0], [0], [1], [0, 0, 1, 1], [], []>} : vector<8x1024xf32>, vector<1024x8xf32>, vector<8x8xf32> -> vector<8x8xf32>
      %34 = arith.addf %32, %33 : vector<8x8xf32>
      %c0_14 = arith.constant 0 : index
      %c0_15 = arith.constant 0 : index
      %35 = vector.load %arg5[%c0_14, %c0_15] : memref<8x8xf32, #tpu.memory_space<vmem>>, vector<8x8xf32>
      tpu.vector_store %arg5[%c0_14, %c0_15], %34 {strides = array<i32>} : memref<8x8xf32, #tpu.memory_space<vmem>>, vector<8x8xf32>,
      %c0_16 = arith.constant 0 : index
      %c0_17 = arith.constant 0 : index
      %36 = vector.load %arg6[%c0_16, %c0_17] : memref<8x1xf32, #tpu.memory_space<vmem>>, vector<8x1xf32>
      %37 = arith.extui %22 : vector<8x1024xi1> to vector<8x1024xi32>
      %38 = arith.sitofp %37 : vector<8x1024xi32> to vector<8x1024xf32>
      %cst_18 = arith.constant dense<0.000000e+00> : vector<8xf32>
      %39 = vector.multi_reduction <add>, %38, %cst_18 [1] : vector<8x1024xf32> to vector<8xf32>
      %40 = vector.shape_cast %39 : vector<8xf32> to vector<8x1xf32>
      %41 = arith.addf %36, %40 : vector<8x1xf32>
      %c0_19 = arith.constant 0 : index
      %c0_20 = arith.constant 0 : index
      %42 = vector.load %arg6[%c0_19, %c0_20] : memref<8x1xf32, #tpu.memory_space<vmem>>, vector<8x1xf32>
      tpu.vector_store %arg6[%c0_19, %c0_20], %41 {strides = array<i32>} : memref<8x1xf32, #tpu.memory_space<vmem>>, vector<8x1xf32>,
    } else {
    }
    %c0_i32_8 = arith.constant 0 : i32
    %14 = arith.cmpi eq, %arg0, %c0_i32_8 : i32
    %15 = arith.extui %14 : i1 to i32
    %c0_i32_9 = arith.constant 0 : i32
    %16 = arith.cmpi ne, %15, %c0_i32_9 : i32
    scf.if %16 {
      %c0_10 = arith.constant 0 : index
      %c0_11 = arith.constant 0 : index
      %17 = vector.load %arg6[%c0_10, %c0_11] : memref<8x1xf32, #tpu.memory_space<vmem>>, vector<8x1xf32>
      %c0_12 = arith.constant 0 : index
      %c0_13 = arith.constant 0 : index
      %18 = vector.load %arg5[%c0_12, %c0_13] : memref<8x8xf32, #tpu.memory_space<vmem>>, vector<8x8xf32>
      %cst = arith.constant 1.000000e+00 : f32
      %19 = vector.broadcast %cst : f32 to vector<8x1xf32>
      %20 = arith.maximumf %17, %19 : vector<8x1xf32>
      %21 = vector.broadcast %20 : vector<8x1xf32> to vector<8x8xf32>
      %22 = arith.divf %18, %21 : vector<8x8xf32>
      %c0_14 = arith.constant 0 : index
      %c0_15 = arith.constant 0 : index
      %c0_16 = arith.constant 0 : index
      %23 = vector.load %arg3[%c0_14, %c0_15, %c0_16] : memref<3x128x128xf32, #tpu.memory_space<vmem>>, vector<1x128x128xf32>
      %24 = vector.shape_cast %23 : vector<1x128x128xf32> to vector<128x128xf32>
      %25 = vector.extract_strided_slice %24 {offsets = [0, 0], sizes = [8, 128], strides = [1, 1]} : vector<128x128xf32> to vector<8x128xf32>
      %cst_17 = arith.constant dense<0.000000e+00> : vector<8x128xf32>
      %26 = tpu.matmul %22, %25, %cst_17 {dimension_numbers = #tpu.dot_dimension_numbers<[1], [0], [0], [1], [0, 0, 1, 1], [], []>} : vector<8x8xf32>, vector<8x128xf32>, vector<8x128xf32> -> vector<8x128xf32>
      %27 = vector.extract_strided_slice %24 {offsets = [127, 0], sizes = [1, 128], strides = [1, 1]} : vector<128x128xf32> to vector<1x128xf32>
      %28 = vector.broadcast %27 : vector<1x128xf32> to vector<8x128xf32>
      %29 = arith.addf %26, %28 : vector<8x128xf32>
      %cst_18 = arith.constant 0.000000e+00 : f32
      %30 = vector.broadcast %cst_18 : f32 to vector<8x128xf32>
      %31 = arith.maximumf %29, %30 : vector<8x128xf32>
      %c1 = arith.constant 1 : index
      %c0_19 = arith.constant 0 : index
      %c0_20 = arith.constant 0 : index
      %32 = vector.load %arg3[%c1, %c0_19, %c0_20] : memref<3x128x128xf32, #tpu.memory_space<vmem>>, vector<1x128x128xf32>
      %33 = vector.shape_cast %32 : vector<1x128x128xf32> to vector<128x128xf32>
      %cst_21 = arith.constant dense<0.000000e+00> : vector<8x128xf32>
      %34 = tpu.matmul %31, %33, %cst_21 {dimension_numbers = #tpu.dot_dimension_numbers<[1], [0], [0], [1], [0, 0, 1, 1], [], []>} : vector<8x128xf32>, vector<128x128xf32>, vector<8x128xf32> -> vector<8x128xf32>
      %cst_22 = arith.constant 0.000000e+00 : f32
      %35 = vector.broadcast %cst_22 : f32 to vector<8x128xf32>
      %36 = arith.maximumf %34, %35 : vector<8x128xf32>
      %c2 = arith.constant 2 : index
      %c0_23 = arith.constant 0 : index
      %c0_24 = arith.constant 0 : index
      %37 = vector.load %arg3[%c2, %c0_23, %c0_24] : memref<3x128x128xf32, #tpu.memory_space<vmem>>, vector<1x128x128xf32>
      %38 = vector.shape_cast %37 : vector<1x128x128xf32> to vector<128x128xf32>
      %cst_25 = arith.constant dense<0.000000e+00> : vector<8x128xf32>
      %39 = tpu.matmul %36, %38, %cst_25 {dimension_numbers = #tpu.dot_dimension_numbers<[1], [0], [0], [1], [0, 0, 1, 1], [], []>} : vector<8x128xf32>, vector<128x128xf32>, vector<8x128xf32> -> vector<8x128xf32>
      %c0_26 = arith.constant 0 : index
      %c0_27 = arith.constant 0 : index
      %40 = vector.load %arg4[%c0_26, %c0_27] : memref<8x128xf32, #tpu.memory_space<vmem>>, vector<8x128xf32>
      tpu.vector_store %arg4[%c0_26, %c0_27], %39 {strides = array<i32>} : memref<8x128xf32, #tpu.memory_space<vmem>>, vector<8x128xf32>,
    } else {
    }
    return
  }
  func.func @transform_0(%arg0: i32) -> (i32, i32) {
    %c0_i32 = arith.constant 0 : i32
    %c0_i32_0 = arith.constant 0 : i32
    return %c0_i32, %arg0 : i32, i32
  }
  func.func @transform_1(%arg0: i32) -> (i32, i32) {
    %c0_i32 = arith.constant 0 : i32
    %c0_i32_0 = arith.constant 0 : i32
    return %arg0, %c0_i32 : i32, i32
  }
  func.func @transform_2(%arg0: i32) -> (i32, i32, i32) {
    %c0_i32 = arith.constant 0 : i32
    %c0_i32_0 = arith.constant 0 : i32
    %c0_i32_1 = arith.constant 0 : i32
    %c0_i32_2 = arith.constant 0 : i32
    return %c0_i32, %c0_i32_0, %c0_i32_1 : i32, i32, i32
  }
  func.func @transform_3(%arg0: i32) -> (i32, i32) {
    %c0_i32 = arith.constant 0 : i32
    %c0_i32_0 = arith.constant 0 : i32
    %c0_i32_1 = arith.constant 0 : i32
    return %c0_i32, %c0_i32_0 : i32, i32
  }
}

</mosaic_0001>

<bundles_post_ra>
// kernel: tpu_custom_call.1
= control target key start
LH: loop header
LB: loop body
LE: loop exit
PB: predicated region body
PF: predicated region fallthrough
CT: control target
= control target key end

     0   :  { %v152_v1 = vlaneseq  ;;  %v1483_v26 = vmov 0.0   ;;  %vm21_vm10 = vcmask 7168   ;;  %s2086_s0 = inlined_call_operand.vmem [shape: s32[1,1000], index: 0, kind: input, shape index: {}]   ;;  %s2087_s1 = inlined_call_operand.vmem [shape: f32[1000,8], index: 1, kind: input, shape index: {}]   ;;  %s2088_s2 = inlined_call_operand.vmem [shape: f32[3,128,128], index: 2, kind: input, shape index: {}]   ;;  %s2089_s3 = inlined_call_operand.hbm [shape: f32[8,128], index: 3, kind: output, shape index: {}]  }
   0x1   :  { %v1510_v0 = vld [vmem:[%s2086_s0] sm:$0xff]  ;;  %v71_v2 = vld [vmem:[%s2087_s1 + $0x178] sm:$0xff]  ;;  %v70_v7 = vld [vmem:[%s2087_s1 + $0x170] sm:$0xff]  ;;  %22 = vst.msk [vmem:[#allocation3] sm:$0xff] %vm21_vm10, %v1483_v26 }
   0x2   :  { %v39_v3 = vld [vmem:[%s2087_s1 + $0x78] sm:$0xff]  ;;  %v154_v4 = vperm.slane %v1510_v0, 0  ;;  %v155_v5 = vperm.slane %v1510_v0, 1  ;;  %v156_v6 = vperm.slane %v1510_v0, 2  ;;  %1107 = vmatpush.msra.mxu2 %v71_v2  ;;  %v38_v8 = vld [vmem:[%s2087_s1 + $0x70] sm:$0xff]  ;;  %v153_v9 = vshrl.u32 %v152_v1, 7 }
   0x3   :  { %1067 = vmatpush.msra.mxu0 %v39_v3  ;;  %v157_v10 = vperm.slane %v1510_v0, 3  ;;  %v55_v11 = vld [vmem:[%s2087_s1 + $0xf8] sm:$0xff]  ;;  %v69_v12 = vld [vmem:[%s2087_s1 + $0x168] sm:$0xff]  ;;  %v371_v13 = vand.u32 127, %v152_v1  ;;  %v54_v15 = vld [vmem:[%s2087_s1 + $0xf0] sm:$0xff]  ;;  %v158_v16 = vperm.slane %v1510_v0, 4 }
   0x4   :  { %1108 = vmatpush.msra.mxu2 %v70_v7  ;;  %v37_v14 = vld [vmem:[%s2087_s1 + $0x68] sm:$0xff]  ;;  %vm1541_vm0 = vcmp.eq.s32.totalorder %v153_v9, %v154_v4  ;;  %vm1545_vm1 = vcmp.eq.s32.totalorder %v153_v9, %v155_v5  ;;  %vm1549_vm2 = vcmp.eq.s32.totalorder %v153_v9, %v156_v6  ;;  %1087 = vmatpush.msra.mxu1 %v55_v11  ;;  %v68_v20 = vld [vmem:[%s2087_s1 + $0x160] sm:$0xff]  ;;  %v87_v23 = vld [vmem:[%s2087_s1 + $0x1f8] sm:$0xff]  ;;  %v159_v24 = vperm.slane %v1510_v0, 5 }
   0x5   :  { %1068 = vmatpush.msra.mxu0 %v38_v8  ;;  %v36_v21 = vld [vmem:[%s2087_s1 + $0x60] sm:$0xff]  ;;  %v53_v22 = vld [vmem:[%s2087_s1 + $0xe8] sm:$0xff]  ;;  %vm1566_vm3 = vcmp.eq.s32.totalorder %v153_v9, %v157_v10  ;;  %v1401_v27 = vsel %vm1541_vm0, 1.0, %v1483_v26  ;;  %v1402_v28 = vsel %vm1545_vm1, 1.0, %v1483_v26  ;;  %v67_v29 = vld [vmem:[%s2087_s1 + $0x158] sm:$0xff]  ;;  %v161_v31 = vperm.slane %v1510_v0, 7  ;;  %1127 = vmatpush.msra.mxu3 %v87_v23 }
   0x6   :  { %1109 = vmatpush.msra.mxu2 %v69_v12  ;;  %1088 = vmatpush.msra.mxu1 %v54_v15  ;;  %v86_v30 = vld [vmem:[%s2087_s1 + $0x1f0] sm:$0xff]  ;;  %v378_v32 = vadd.s32 896, %v371_v13  ;;  %v1403_v33 = vsel %vm1549_vm2, 1.0, %v1483_v26  ;;  %v35_v34 = vld [vmem:[%s2087_s1 + $0x58] sm:$0xff]  ;;  %v52_v35 = vld [vmem:[%s2087_s1 + $0xe0] sm:$0xff]  ;;  %v160_v36 = vperm.slane %v1510_v0, 6  ;;  %vm1593_vm4 = vcmp.eq.s32.totalorder %v153_v9, %v158_v16 }
   0x7   :  { %1069 = vmatpush.msra.mxu0 %v37_v14  ;;  %v1231_v38 = vadd.f32 %v1402_v28, %v1401_v27  ;;  %v66_v39 = vld [vmem:[%s2087_s1 + $0x150] sm:$0xff]  ;;  %v85_v40 = vld [vmem:[%s2087_s1 + $0x1e8] sm:$0xff]  ;;  %v1404_v41 = vsel %vm1566_vm3, 1.0, %v1483_v26  ;;  %1128 = vmatpush.msra.mxu3 %v86_v30  ;;  %v51_v43 = vld [vmem:[%s2087_s1 + $0xd8] sm:$0xff]  ;;  %vm1612_vm5 = vcmp.eq.s32.totalorder %v153_v9, %v159_v24  ;;  %vm1622_vm6 = vcmp.eq.s32.totalorder %v153_v9, %v161_v31 }
   0x8   :  { %1110 = vmatpush.msra.mxu2 %v68_v20  ;;  %1089 = vmatpush.msra.mxu1 %v53_v22  ;;  %v34_v42 = vld [vmem:[%s2087_s1 + $0x50] sm:$0xff]  ;;  %v65_v46 = vld [vmem:[%s2087_s1 + $0x148] sm:$0xff]  ;;  %v84_v47 = vld [vmem:[%s2087_s1 + $0x1e0] sm:$0xff]  ;;  %vm513_vm7 = vcmp.lt.s32.totalorder %v378_v32, 1000  ;;  %v1405_v49 = vsel %vm1593_vm4, 1.0, %v1483_v26  ;;  %vm1635_vm8 = vcmp.eq.s32.totalorder %v153_v9, %v160_v36  ;;  %v1406_v56 = vsel %vm1612_vm5, 1.0, %v1483_v26 }
   0x9   :  { %1070 = vmatpush.msra.mxu0 %v36_v21  ;;  %v1232_v45 = vadd.f32 %v1403_v33, %v1231_v38  ;;  %1129 = vmatpush.msra.mxu3 %v85_v40  ;;  %v33_v50 = vld [vmem:[%s2087_s1 + $0x48] sm:$0xff]  ;;  %v50_v51 = vld [vmem:[%s2087_s1 + $0xd0] sm:$0xff]  ;;  %v64_v54 = vld [vmem:[%s2087_s1 + $0x140] sm:$0xff]  ;;  %v1407_v63 = vsel %vm1635_vm8, 1.0, %v1483_v26 }
   0xa   :  { %1111 = vmatpush.msra.mxu2 %v67_v29  ;;  %1090 = vmatpush.msra.mxu1 %v52_v35  ;;  %v83_v55 = vld [vmem:[%s2087_s1 + $0x1d8] sm:$0xff]  ;;  %v32_v57 = vld [vmem:[%s2087_s1 + $0x40] sm:$0xff]  ;;  %v49_v58 = vld [vmem:[%s2087_s1 + $0xc8] sm:$0xff] }
   0xb   :  { %1071 = vmatpush.msra.mxu0 %v35_v34  ;;  %v1233_v53 = vadd.f32 %v1404_v41, %v1232_v45  ;;  %1130 = vmatpush.msra.mxu3 %v84_v47  ;;  %vm1657_vm9 = vmand %vm1622_vm6, %vm513_vm7  ;;  %v63_v61 = vld [vmem:[%s2087_s1 + $0x138] sm:$0xff]  ;;  %v82_v62 = vld [vmem:[%s2087_s1 + $0x1d0] sm:$0xff] }
   0xc   :  { %1112 = vmatpush.msra.mxu2 %v66_v39  ;;  %1091 = vmatpush.msra.mxu1 %v51_v43  ;;  %v31_v0 = vld [vmem:[%s2087_s1 + $0x38] sm:$0xff]  ;;  %v48_v1 = vld [vmem:[%s2087_s1 + $0xc0] sm:$0xff]  ;;  %v62_v3 = vld [vmem:[%s2087_s1 + $0x130] sm:$0xff]  ;;  %v1408_v5 = vsel %vm1657_vm9, 1.0, %v1483_v26 }
   0xd   :  { %1072 = vmatpush.msra.mxu0 %v34_v42  ;;  %v1234_v60 = vadd.f32 %v1405_v49, %v1233_v53  ;;  %1131 = vmatpush.msra.mxu3 %v83_v55  ;;  %v81_v4 = vld [vmem:[%s2087_s1 + $0x1c8] sm:$0xff]  ;;  %v30_v6 = vld [vmem:[%s2087_s1 + $0x30] sm:$0xff]  ;;  %v47_v7 = vld [vmem:[%s2087_s1 + $0xb8] sm:$0xff] }
   0xe   :  { %1113 = vmatpush.msra.mxu2 %v65_v46  ;;  %1092 = vmatpush.msra.mxu1 %v50_v51  ;;  %v61_v9 = vld [vmem:[%s2087_s1 + $0x128] sm:$0xff]  ;;  %v80_v10 = vld [vmem:[%s2087_s1 + $0x1c0] sm:$0xff]  ;;  %v46_v13 = vld [vmem:[%s2087_s1 + $0xb0] sm:$0xff] }
   0xf   :  { %1073 = vmatpush.msra.mxu0 %v33_v50  ;;  %v1235_v2 = vadd.f32 %v1406_v56, %v1234_v60  ;;  %1132 = vmatpush.msra.mxu3 %v82_v62  ;;  %v29_v11 = vld [vmem:[%s2087_s1 + $0x28] sm:$0xff]  ;;  %v60_v14 = vld [vmem:[%s2087_s1 + $0x120] sm:$0xff]  ;;  %v79_v16 = vld [vmem:[%s2087_s1 + $0x1b8] sm:$0xff] }
  0x10   :  { %1114 = vmatpush.msra.mxu2 %v64_v54  ;;  %1093 = vmatpush.msra.mxu1 %v49_v58  ;;  %v28_v15 = vld [vmem:[%s2087_s1 + $0x20] sm:$0xff]  ;;  %v45_v20 = vld [vmem:[%s2087_s1 + $0xa8] sm:$0xff]  ;;  %v59_v21 = vld [vmem:[%s2087_s1 + $0x118] sm:$0xff] }
  0x11   :  { %1074 = vmatpush.msra.mxu0 %v32_v57  ;;  %v1236_v8 = vadd.f32 %v1407_v63, %v1235_v2  ;;  %1133 = vmatpush.msra.mxu3 %v81_v4  ;;  %v27_v22 = vld [vmem:[%s2087_s1 + $0x18] sm:$0xff]  ;;  %v78_v23 = vld [vmem:[%s2087_s1 + $0x1b0] sm:$0xff]  ;;  %v44_v24 = vld [vmem:[%s2087_s1 + $0xa0] sm:$0xff] }
  0x12   :  { %1115 = vmatpush.msra.mxu2 %v63_v61  ;;  %1094 = vmatpush.msra.mxu1 %v48_v1  ;;  %v58_v27 = vld [vmem:[%s2087_s1 + $0x110] sm:$0xff]  ;;  %v77_v29 = vld [vmem:[%s2087_s1 + $0x1a8] sm:$0xff]  ;;  %v43_v30 = vld [vmem:[%s2087_s1 + $0x98] sm:$0xff] }
  0x13   :  { %1075 = vmatpush.msra.mxu0 %v31_v0  ;;  %v1237_v12 = vadd.f32 %v1408_v5, %v1236_v8  ;;  %1134 = vmatpush.msra.mxu3 %v80_v10  ;;  %v26_v28 = vld [vmem:[%s2087_s1 + $0x10] sm:$0xff]  ;;  %v57_v31 = vld [vmem:[%s2087_s1 + $0x108] sm:$0xff]  ;;  %v76_v33 = vld [vmem:[%s2087_s1 + $0x1a0] sm:$0xff] }
  0x14   :  { %1116 = vmatpush.msra.mxu2 %v62_v3  ;;  %1095 = vmatpush.msra.mxu1 %v47_v7  ;;  %v25_v32 = vld [vmem:[%s2087_s1 + $0x8] sm:$0xff]  ;;  %v42_v34 = vld [vmem:[%s2087_s1 + $0x90] sm:$0xff]  ;;  %v56_v35 = vld [vmem:[%s2087_s1 + $0x100] sm:$0xff] }
  0x15   :  { %1076 = vmatpush.msra.mxu0 %v30_v6  ;;  %1238 = vadd.xlane.f32.xlu0 %v1237_v12  ;;  %v135_v36 = vld [vmem:[%s2087_s1 + $0x378] sm:$0xff]  ;;  %v24_v38 = vld [vmem:[%s2087_s1] sm:$0xff]  ;;  %v41_v39 = vld [vmem:[%s2087_s1 + $0x88] sm:$0xff] }
  0x16   :  { %1117 = vmatpush.msra.mxu2 %v61_v9  ;;  %1096 = vmatpush.msra.mxu1 %v46_v13  ;;  %v75_v40 = vld [vmem:[%s2087_s1 + $0x198] sm:$0xff]  ;;  %v134_v42 = vld [vmem:[%s2087_s1 + $0x370] sm:$0xff]  ;;  %v40_v43 = vld [vmem:[%s2087_s1 + $0x80] sm:$0xff] }
  0x17   :  { %1077 = vmatpush.msra.mxu0 %v29_v11  ;;  %1135 = vmatpush.msra.mxu3 %v79_v16  ;;  %v103_v41 = vld [vmem:[%s2087_s1 + $0x278] sm:$0xff]  ;;  %v74_v45 = vld [vmem:[%s2087_s1 + $0x190] sm:$0xff]  ;;  %v133_v48 = vld [vmem:[%s2087_s1 + $0x368] sm:$0xff] }
  0x18   :  { %1118 = vmatpush.msra.mxu2 %v60_v14  ;;  %1097 = vmatpush.msra.mxu1 %v45_v20  ;;  %v102_v46 = vld [vmem:[%s2087_s1 + $0x270] sm:$0xff]  ;;  %v119_v47 = vld [vmem:[%s2087_s1 + $0x2f8] sm:$0xff]  ;;  %v73_v49 = vld [vmem:[%s2087_s1 + $0x188] sm:$0xff] }
  0x19   :  { %1078 = vmatpush.msra.mxu0 %v28_v15  ;;  %1136 = vmatpush.msra.mxu3 %v78_v23  ;;  %v101_v50 = vld [vmem:[%s2087_s1 + $0x268] sm:$0xff]  ;;  %v118_v51 = vld [vmem:[%s2087_s1 + $0x2f0] sm:$0xff]  ;;  %v132_v53 = vld [vmem:[%s2087_s1 + $0x360] sm:$0xff] }
  0x1a   :  { %1119 = vmatpush.msra.mxu2 %v59_v21  ;;  %1098 = vmatpush.msra.mxu1 %v44_v24  ;;  %v72_v54 = vld [vmem:[%s2087_s1 + $0x180] sm:$0xff]  ;;  %v117_v56 = vld [vmem:[%s2087_s1 + $0x2e8] sm:$0xff]  ;;  %v131_v57 = vld [vmem:[%s2087_s1 + $0x358] sm:$0xff] }
  0x1b   :  { %1079 = vmatpush.msra.mxu0 %v27_v22  ;;  %1137 = vmatpush.msra.mxu3 %v77_v29  ;;  %v100_v55 = vld [vmem:[%s2087_s1 + $0x260] sm:$0xff]  ;;  %v99_v60 = vld [vmem:[%s2087_s1 + $0x258] sm:$0xff]  ;;  %v130_v62 = vld [vmem:[%s2087_s1 + $0x350] sm:$0xff] }
  0x1c   :  { %1120 = vmatpush.msra.mxu2 %v58_v27  ;;  %1099 = vmatpush.msra.mxu1 %v43_v30  ;;  %v148_v58 = vld [vmem:[%s2087_s1 + $0x3e0] sm:$0xff]  ;;  %v147_v63 = vld [vmem:[%s2087_s1 + $0x3d8] sm:$0xff]  ;;  %v98_v0 = vld [vmem:[%s2087_s1 + $0x250] sm:$0xff] }
  0x1d   :  { %1080 = vmatpush.msra.mxu0 %v26_v28  ;;  %1138 = vmatpush.msra.mxu3 %v76_v33  ;;  %v116_v61 = vld [vmem:[%s2087_s1 + $0x2e0] sm:$0xff]  ;;  %v115_v1 = vld [vmem:[%s2087_s1 + $0x2d8] sm:$0xff]  ;;  %v129_v2 = vld [vmem:[%s2087_s1 + $0x348] sm:$0xff] }
  0x1e   :  { %1121 = vmatpush.msra.mxu2 %v57_v31  ;;  %1100 = vmatpush.msra.mxu1 %v42_v34  ;;  %v146_v3 = vld [vmem:[%s2087_s1 + $0x3d0] sm:$0xff]  ;;  %v97_v4 = vld [vmem:[%s2087_s1 + $0x248] sm:$0xff] }
  0x1f   :  { %1081 = vmatpush.msra.mxu0 %v25_v32  ;;  %1139 = vmatpush.msra.mxu3 %v75_v40  ;;  %v114_v5 = vld [vmem:[%s2087_s1 + $0x2d0] sm:$0xff] }
  0x20   :  { %1122 = vmatpush.msra.mxu2 %v56_v35  ;;  %1101 = vmatpush.msra.mxu1 %v41_v39 }
  0x21   :  { %1082 = vmatpush.msra.mxu0 %v24_v38  ;;  %1140 = vmatpush.msra.mxu3 %v74_v45 }
  0x22   :  { %1187 = vmatpush.msrb.mxu2 %v135_v36  ;;  %1102 = vmatpush.msra.mxu1 %v40_v43 }
  0x23   :  { %1147 = vmatpush.msrb.mxu0 %v103_v41  ;;  %1141 = vmatpush.msra.mxu3 %v73_v49 }
  0x24   :  { %1188 = vmatpush.msrb.mxu2 %v134_v42  ;;  %1167 = vmatpush.msrb.mxu1 %v119_v47 }
  0x25   :  { %1148 = vmatpush.msrb.mxu0 %v102_v46  ;;  %1142 = vmatpush.msra.mxu3 %v72_v54 }
  0x26   :  { %1189 = vmatpush.msrb.mxu2 %v133_v48  ;;  %1168 = vmatpush.msrb.mxu1 %v118_v51 }
  0x27   :  { %1149 = vmatpush.msrb.mxu0 %v101_v50  ;;  %1210 = vmatpush.msrb.mxu3 %v148_v58 }
  0x28   :  { %1190 = vmatpush.msrb.mxu2 %v132_v53  ;;  %1169 = vmatpush.msrb.mxu1 %v117_v56 }
  0x29   :  { %1150 = vmatpush.msrb.mxu0 %v100_v55  ;;  %1211 = vmatpush.msrb.mxu3 %v147_v63 }
  0x2a   :  { %1191 = vmatpush.msrb.mxu2 %v131_v57  ;;  %1170 = vmatpush.msrb.mxu1 %v116_v61 }
  0x2b   :  { %1151 = vmatpush.msrb.mxu0 %v99_v60 }
  0x2c   :  { %1192 = vmatpush.msrb.mxu2 %v130_v62 }
  0x2d   :  { %8 = vsyncpa [#allocation5], 0  ;;  %1152 = vmatpush.msrb.mxu0 %v98_v0  ;;  %1171 = vmatpush.msrb.mxu1 %v115_v1  ;;  %v128_v6 = vld [vmem:[%s2087_s1 + $0x340] sm:$0xff]  ;;  %v145_v7 = vld [vmem:[%s2087_s1 + $0x3c8] sm:$0xff]  ;;  %v1484_v33 = vmov 1.0   ;;  %v1485_v48 = vmov 0  }
  0x2e   :  { %1193 = vmatpush.msrb.mxu2 %v129_v2  ;;  %1212 = vmatpush.msrb.mxu3 %v146_v3  ;;  %v96_v8 = vld [vmem:[%s2087_s1 + $0x240] sm:$0xff]  ;;  %v113_v9 = vld [vmem:[%s2087_s1 + $0x2c8] sm:$0xff]  ;;  %v127_v10 = vld [vmem:[%s2087_s1 + $0x338] sm:$0xff]  ;;  %vm19_vm11 = vcmask 64512   ;;  %s1486_s20 = smov [#allocation4]   ;;  %s1376_s24 = sshll.u32 %s2089_s3, 4  ;;  %s1377_s24 = int_to_ptr.hbm [resolvable:$true] %s1376_s24 }
  0x2f   :  { %1153 = vmatpush.msrb.mxu0 %v97_v4  ;;  %1172 = vmatpush.msrb.mxu1 %v114_v5  ;;  %v144_v11 = vld [vmem:[%s2087_s1 + $0x3c0] sm:$0xff]  ;;  %v95_v12 = vld [vmem:[%s2087_s1 + $0x238] sm:$0xff]  ;;  %v126_v14 = vld [vmem:[%s2087_s1 + $0x330] sm:$0xff]  ;;  %20 = vst.msk [vmem:[#allocation2] sm:$0xff] %vm19_vm11, %v1483_v26  ;;  %s1374_s21 = sshll.u32 %s1486_s20, 4  ;;  %s1375_s21 = int_to_ptr.vmem [resolvable:$true] %s1374_s21 }
  0x30   :  { %1194 = vmatpush.msrb.mxu2 %v128_v6  ;;  %1213 = vmatpush.msrb.mxu3 %v145_v7  ;;  %v112_v13 = vld [vmem:[%s2087_s1 + $0x2c0] sm:$0xff]  ;;  %v143_v15 = vld [vmem:[%s2087_s1 + $0x3b8] sm:$0xff]  ;;  %v94_v16 = vld [vmem:[%s2087_s1 + $0x230] sm:$0xff] }
  0x31   :  { %1154 = vmatpush.msrb.mxu0 %v96_v8  ;;  %1173 = vmatpush.msrb.mxu1 %v113_v9  ;;  %v111_v20 = vld [vmem:[%s2087_s1 + $0x2b8] sm:$0xff]  ;;  %v125_v21 = vld [vmem:[%s2087_s1 + $0x328] sm:$0xff]  ;;  %v142_v22 = vld [vmem:[%s2087_s1 + $0x3b0] sm:$0xff] }
  0x32   :  { %1195 = vmatpush.msrb.mxu2 %v127_v10  ;;  %1214 = vmatpush.msrb.mxu3 %v144_v11  ;;  %v93_v23 = vld [vmem:[%s2087_s1 + $0x228] sm:$0xff]  ;;  %v110_v24 = vld [vmem:[%s2087_s1 + $0x2b0] sm:$0xff]  ;;  %v124_v27 = vld [vmem:[%s2087_s1 + $0x320] sm:$0xff] }
  0x33   :  { %1155 = vmatpush.msrb.mxu0 %v95_v12  ;;  %1174 = vmatpush.msrb.mxu1 %v112_v13  ;;  %v141_v28 = vld [vmem:[%s2087_s1 + $0x3a8] sm:$0xff]  ;;  %v92_v29 = vld [vmem:[%s2087_s1 + $0x220] sm:$0xff]  ;;  %v123_v31 = vld [vmem:[%s2087_s1 + $0x318] sm:$0xff] }
  0x34   :  { %1196 = vmatpush.msrb.mxu2 %v126_v14  ;;  %1215 = vmatpush.msrb.mxu3 %v143_v15  ;;  %v109_v30 = vld [vmem:[%s2087_s1 + $0x2a8] sm:$0xff]  ;;  %v140_v32 = vld [vmem:[%s2087_s1 + $0x3a0] sm:$0xff]  ;;  %v91_v34 = vld [vmem:[%s2087_s1 + $0x218] sm:$0xff] }
  0x35   :  { %1156 = vmatpush.msrb.mxu0 %v94_v16  ;;  %1175 = vmatpush.msrb.mxu1 %v111_v20  ;;  %v108_v35 = vld [vmem:[%s2087_s1 + $0x2a0] sm:$0xff]  ;;  %v122_v36 = vld [vmem:[%s2087_s1 + $0x310] sm:$0xff]  ;;  %v139_v19 = vld [vmem:[%s2087_s1 + $0x398] sm:$0xff] }
  0x36   :  { %1197 = vmatpush.msrb.mxu2 %v125_v21  ;;  %1216 = vmatpush.msrb.mxu3 %v142_v22  ;;  %v90_v38 = vld [vmem:[%s2087_s1 + $0x210] sm:$0xff]  ;;  %v107_v39 = vld [vmem:[%s2087_s1 + $0x298] sm:$0xff]  ;;  %v121_v17 = vld [vmem:[%s2087_s1 + $0x308] sm:$0xff] }
  0x37   :  { %1157 = vmatpush.msrb.mxu0 %v93_v23  ;;  %1176 = vmatpush.msrb.mxu1 %v110_v24  ;;  %v138_v25 = vld [vmem:[%s2087_s1 + $0x390] sm:$0xff]  ;;  %v89_v40 = vld [vmem:[%s2087_s1 + $0x208] sm:$0xff]  ;;  %v120_v42 = vld [vmem:[%s2087_s1 + $0x300] sm:$0xff] }
  0x38   :  { %1198 = vmatpush.msrb.mxu2 %v124_v27  ;;  %1217 = vmatpush.msrb.mxu3 %v141_v28  ;;  %v106_v41 = vld [vmem:[%s2087_s1 + $0x290] sm:$0xff]  ;;  %v137_v43 = vld [vmem:[%s2087_s1 + $0x388] sm:$0xff]  ;;  %v88_v18 = vld [vmem:[%s2087_s1 + $0x200] sm:$0xff] }
  0x39   :  { %1411 = vmatmul.msk.f32.vlgmr.msra.gmra.mxu2 %vm1549_vm2, %v1484_v33  ;;  %1158 = vmatpush.msrb.mxu0 %v92_v29  ;;  %v105_v45 = vld [vmem:[%s2087_s1 + $0x288] sm:$0xff]  ;;  %v136_v46 = vld [vmem:[%s2087_s1 + $0x380] sm:$0xff]  ;;  %v1433_v6 = vld [vmem:[%s2088_s2 + $0xf8] sm:$0xff] }
  0x3a   :  { %1177 = vmatpush.msrb.mxu1 %v109_v30  ;;  %1199 = vmatpush.msrb.mxu2 %v123_v31  ;;  %v104_v47 = vld [vmem:[%s2087_s1 + $0x280] sm:$0xff]  ;;  %v1230_v52 = vld [vmem:[#allocation3] sm:$0xff]  ;;  %v1432_v26 = vld [vmem:[%s2088_s2 + $0xf0] sm:$0xff] }
  0x3b   :  { %1218 = vmatpush.msrb.mxu3 %v140_v32  ;;  %1409 = vmatmul.msk.f32.vlgmr.msra.gmra.mxu0 %vm1541_vm0, %v1484_v33  ;;  %v1066_v3 = vld [vmem:[#allocation2] sm:$0xff]  ;;  %v1431_v7 = vld [vmem:[%s2088_s2 + $0xe8] sm:$0xff]  ;;  %v1429_v9 = vld [vmem:[%s2088_s2 + $0xd8] sm:$0xff] }
  0x3c   :  { %1412 = vmatmul.msk.f32.vlgmr.msra.gmra.mxu3 %vm1566_vm3, %v1484_v33  ;;  %1159 = vmatpush.msrb.mxu0 %v91_v34  ;;  %v1266_v5 = vld [vmem:[%s2088_s2] sm:$0xff]  ;;  %v1428_v10 = vld [vmem:[%s2088_s2 + $0xd0] sm:$0xff]  ;;  %v1427_v11 = vld [vmem:[%s2088_s2 + $0xc8] sm:$0xff] }
  0x3d   :  { %1178 = vmatpush.msrb.mxu1 %v108_v35  ;;  %1200 = vmatpush.msrb.mxu2 %v122_v36  ;;  %v1430_v8 = vld [vmem:[%s2088_s2 + $0xe0] sm:$0xff]  ;;  %v1425_v14 = vld [vmem:[%s2088_s2 + $0xb8] sm:$0xff]  ;;  %v1424_v15 = vld [vmem:[%s2088_s2 + $0xb0] sm:$0xff] }
  0x3e   :  { %1219 = vmatpush.msrb.mxu3 %v139_v19  ;;  %1410 = vmatmul.msk.f32.vlgmr.msra.gmra.mxu1 %vm1545_vm1, %v1484_v33  ;;  %v1426_v13 = vld [vmem:[%s2088_s2 + $0xc0] sm:$0xff]  ;;  %v1423_v16 = vld [vmem:[%s2088_s2 + $0xa8] sm:$0xff]  ;;  %v1421_v24 = vld [vmem:[%s2088_s2 + $0x98] sm:$0xff] }
  0x3f   :  { %1160 = vmatpush.msrb.mxu0 %v90_v38  ;;  %1179 = vmatpush.msrb.mxu1 %v107_v39  ;;  %v1422_v22 = vld [vmem:[%s2088_s2 + $0xa0] sm:$0xff]  ;;  %v1420_v36 = vld [vmem:[%s2088_s2 + $0x90] sm:$0xff]  ;;  %v1419_v19 = vld [vmem:[%s2088_s2 + $0x88] sm:$0xff] }
  0x40   :  { %1201 = vmatpush.msrb.mxu2 %v121_v17  ;;  %1220 = vmatpush.msrb.mxu3 %v138_v25  ;;  %v1418_v38 = vld [vmem:[%s2088_s2 + $0x80] sm:$0xff]  ;;  %v1449_v39 = vld [vmem:[%s2088_s2 + $0x178] sm:$0xff]  ;;  %v1448_v17 = vld [vmem:[%s2088_s2 + $0x170] sm:$0xff] }
  0x41   :  { %1161 = vmatpush.msrb.mxu0 %v89_v40  ;;  %1180 = vmatpush.msrb.mxu1 %v106_v41  ;;  %v1447_v25 = vld [vmem:[%s2088_s2 + $0x168] sm:$0xff]  ;;  %v1446_v40 = vld [vmem:[%s2088_s2 + $0x160] sm:$0xff]  ;;  %v1445_v41 = vld [vmem:[%s2088_s2 + $0x158] sm:$0xff] }
  0x42   :  { %1202 = vmatpush.msrb.mxu2 %v120_v42  ;;  %1221 = vmatpush.msrb.mxu3 %v137_v43  ;;  %v1444_v42 = vld [vmem:[%s2088_s2 + $0x150] sm:$0xff]  ;;  %v1443_v43 = vld [vmem:[%s2088_s2 + $0x148] sm:$0xff] }
  0x43   :  { %1415 = vmatmul.msk.f32.vlgmr.msrb.gmra.mxu2 %vm1635_vm8, %v1484_v33  ;;  %1162 = vmatpush.msrb.mxu0 %v88_v18  ;;  %v1442_v18 = vld [vmem:[%s2088_s2 + $0x140] sm:$0xff] }
  0x44   :  { %1181 = vmatpush.msrb.mxu1 %v105_v45  ;;  %1222 = vmatpush.msrb.mxu3 %v136_v46  ;;  %v1441_v45 = vld [vmem:[%s2088_s2 + $0x138] sm:$0xff]  ;;  %v1440_v46 = vld [vmem:[%s2088_s2 + $0x130] sm:$0xff] }
  0x45   :  { %1413 = vmatmul.msk.f32.vlgmr.msrb.gmra.mxu0 %vm1593_vm4, %v1484_v33  ;;  %1416 = vmatmul.msk.f32.vlgmr.msrb.gmra.mxu3 %vm1657_vm9, %v1484_v33 }
  0x46   :  { %1182 = vmatpush.msrb.mxu1 %v104_v47  ;;  %1454 = vset.pattern.permute.xlu0 %v1485_v48  ;;  %v1439_v47 = vld [vmem:[%s2088_s2 + $0x128] sm:$0xff]  ;;  %v1438_v48 = vld [vmem:[%s2088_s2 + $0x120] sm:$0xff] }
  0x47   :  { %1414 = vmatmul.msk.f32.vlgmr.msrb.gmra.mxu1 %vm1612_vm5, %v1484_v33  ;;  %1287 = vmatpush.msra.mxu3 %v1266_v5 }
  0x48   :  { %1310 = vmatpush.msra.mxu0 %v1433_v6  ;;  %1348 = vmatpush.msra.mxu1 %v1449_v39 }
  0x4a   :  { %1311 = vmatpush.msra.mxu0 %v1432_v26  ;;  %1349 = vmatpush.msra.mxu1 %v1448_v17 }
  0x4c   :  { %1312 = vmatpush.msra.mxu0 %v1431_v7  ;;  %1350 = vmatpush.msra.mxu1 %v1447_v25 }
  0x4e   :  { %1313 = vmatpush.msra.mxu0 %v1430_v8  ;;  %1351 = vmatpush.msra.mxu1 %v1446_v40 }
  0x50   :  { %1314 = vmatpush.msra.mxu0 %v1429_v9  ;;  %1352 = vmatpush.msra.mxu1 %v1445_v41 }
  0x52   :  { %1315 = vmatpush.msra.mxu0 %v1428_v10  ;;  %1353 = vmatpush.msra.mxu1 %v1444_v42 }
  0x54   :  { %1316 = vmatpush.msra.mxu0 %v1427_v11  ;;  %1354 = vmatpush.msra.mxu1 %v1443_v43 }
  0x56   :  { %1317 = vmatpush.msra.mxu0 %v1426_v13  ;;  %1355 = vmatpush.msra.mxu1 %v1442_v18 }
  0x58   :  { %1318 = vmatpush.msra.mxu0 %v1425_v14  ;;  %1356 = vmatpush.msra.mxu1 %v1441_v45 }
  0x5a   :  { %1319 = vmatpush.msra.mxu0 %v1424_v15  ;;  %1357 = vmatpush.msra.mxu1 %v1440_v46 }
  0x5c   :  { %1320 = vmatpush.msra.mxu0 %v1423_v16  ;;  %1358 = vmatpush.msra.mxu1 %v1439_v47 }
  0x5e   :  { %1321 = vmatpush.msra.mxu0 %v1422_v22  ;;  %1359 = vmatpush.msra.mxu1 %v1438_v48 }
  0x60   :  { %1322 = vmatpush.msra.mxu0 %v1421_v24 }
  0x62   :  { %1323 = vmatpush.msra.mxu0 %v1420_v36 }
  0x64   :  { %1324 = vmatpush.msra.mxu0 %v1419_v19 }
  0x66   :  { %1325 = vmatpush.msra.mxu0 %v1418_v38 }
  0x88   :  { %v1239_v49 = vpop.xlane.xlu0 %1238 }
  0x89   :  { %v1240_v50 = vadd.f32 %v1239_v49, %v1230_v52  ;;  %v1267_v52 = vld [vmem:[%s2088_s2 + $0x78] sm:$0xff] }
  0x8a   :  { %v1437_v49 = vld [vmem:[%s2088_s2 + $0x118] sm:$0xff] }
  0x8b   :  { %1242 = vst.msk [vmem:[#allocation3] sm:$0xff] %vm21_vm10, %v1240_v50  ;;  %v1268_v50 = vperm.slane %v1267_v52, 7  ;;  %1360 = vmatpush.msra.mxu1 %v1437_v49 }
  0x92   :  { %v1243_v51 = vld [vmem:[#allocation3] sm:$0xff] }
  0x93   :  { %v1245_v53 = vmax.f32 %v1243_v51, 1.0  ;;  %v1436_v51 = vld [vmem:[%s2088_s2 + $0x110] sm:$0xff] }
  0x94   :  { %1361 = vmatpush.msra.mxu1 %v1436_v51 }
  0x95   :  { %1248 = vperm.xlu0 %1454, %v1245_v53  }
  0xb8   :  { %v1084_v37 = vpop.f32.mrf.mxu0 }
  0xbb   :  { %v1104_v54 = vpop.f32.mrf.mxu1 }
  0xbc   :  { %v1105_v55 = vadd.f32 %v1104_v54, %v1084_v37  ;;  %v1124_v56 = vpop.f32.mrf.mxu2 }
  0xbe   :  { %v1125_v59 = vadd.f32 %v1124_v56, %v1105_v55  ;;  %v1435_v55 = vld [vmem:[%s2088_s2 + $0x108] sm:$0xff]  ;;  %v1434_v56 = vld [vmem:[%s2088_s2 + $0x100] sm:$0xff] }
  0xbf   :  { %v1144_v57 = vpop.f32.mrf.mxu3  ;;  %1362 = vmatpush.msra.mxu1 %v1435_v55 }
  0xc0   :  { %v1145_v58 = vadd.f32 %v1144_v57, %v1125_v59 }
  0xc1   :  { %1363 = vmatpush.msra.mxu1 %v1434_v56 }
  0xc2   :  { %v1164_v60 = vpop.f32.mrf.mxu0 }
  0xc3   :  { %v1165_v44 = vadd.f32 %v1164_v60, %v1145_v58 }
  0xc4   :  { %v1184_v61 = vpop.f32.mrf.mxu1 }
  0xc5   :  { %v1185_v62 = vadd.f32 %v1184_v61, %v1165_v44 }
  0xc6   :  { %v1204_v63 = vpop.f32.mrf.mxu2 }
  0xc7   :  { %v1205_v0 = vadd.f32 %v1204_v63, %v1185_v62 }
  0xc8   :  { %v1224_v1 = vpop.f32.mrf.mxu3 }
  0xc9   :  { %v1225_v2 = vadd.f32 %v1224_v1, %v1205_v0 }
  0xcb   :  { %v1227_v4 = vadd.f32 %v1225_v2, %v1066_v3 }
  0xcd   :  { %1229 = vst.msk [vmem:[#allocation2] sm:$0xff] %vm19_vm11, %v1227_v4 }
  0xd4   :  { %v1244_v34 = vld [vmem:[#allocation2] sm:$0xff] }
 0x107   :  { %v1249_v12 = vpop.permute.xlu0 %1248 }
 0x108   :  { %1455 = vrcp.f32 %v1249_v12  ;;  %v1262_v27 = vand.u32 2147483648, %v1249_v12  ;;  %v1260_v29 = vand.u32 2147483647, %v1249_v12  ;;  %vm1256_vm13 = vweird.f32 %v1249_v12 }
 0x10a   :  { %v1263_v31 = vor.u32 1.1754944e-38, %v1262_v27  ;;  %vm1261_vm15 = vcmp.eq.f32.partialorder %v1260_v29, 8.507059e+37 }
 0x10e   :  { %v1456_v20 = vpop.eup %1455 }
 0x10f   :  { %v1252_v21 = vmul.f32 %v1456_v20, %v1249_v12  ;;  %vm1257_vm12 = vweird.f32 %v1456_v20 }
 0x110   :  { %vm1258_vm14 = vmor %vm1256_vm13, %vm1257_vm12 }
 0x111   :  { %v1253_v23 = vsub.f32 1.0, %v1252_v21 }
 0x113   :  { %v1254_v28 = vmul.f32 %v1456_v20, %v1253_v23 }
 0x115   :  { %v1255_v30 = vadd.f32 %v1456_v20, %v1254_v28 }
 0x117   :  { %v1259_v32 = vsel %vm1258_vm14, %v1456_v20, %v1255_v30 }
 0x118   :  { %v1264_v33 = vsel %vm1261_vm15, %v1263_v31, %v1259_v32 }
 0x119   :  { %v1265_v35 = vmul.f32 %v1264_v33, %v1244_v34 }
 0x11b   :  { %1417 = vmatmul.msk.f32.vlgmr.msra.gmra.mxu3 %vm19_vm11, %v1265_v35 }
 0x19e   :  { %v1289_v53 = vpop.f32.mrf.mxu3 }
 0x19f   :  { %v1290_v54 = vadd.f32 %v1289_v53, %v1268_v50 }
 0x1a1   :  { %v1292_v37 = vmax.f32 %v1290_v54, 0.0 }
 0x1a3   :  { %1326 = vmatmul.f32.vlgmr.msra.gmra.mxu0 %v1292_v37 }
 0x220   :  { %v1327_v59 = vpop.f32.mrf.mxu0 }
 0x221   :  { %v1330_v57 = vmax.f32 %v1327_v59, 0.0 }
 0x223   :  { %1364 = vmatmul.f32.vlgmr.msra.gmra.mxu1 %v1330_v57 }
 0x2a0   :  { %v1365_v58 = vpop.f32.mrf.mxu1 }
 0x2a1   :  { %1368 = vst [vmem:[#allocation4] sm:$0xff] %v1365_v58 }
 0x2a2   :  { %1379 = dma.vmem_to_hbm [thread:$0]  %s1375_s21, 128, %s1377_s24, [#allocation5]  }
 0x2a3   :  { %1481 = dma.done.wait [#allocation5], 128  }
 0x2a4   :  { %1482 = vsyncadd [#allocation5], 4294967168 }
 0x2a5   :  { %1384 = vsyncpa [#allocation5], 1 }

</bundles_post_ra>
